<compile_context>
chip_gen: v7x
topology: tpu7x:2x2x1
jax: 0.10.0
libtpu: 0.0.40
codegen_flags: <defaults>
</compile_context>

<pallas_src>
import math
from functools import partial

import jax
import jax.numpy as jnp
from jax.experimental import pallas as pl
from jax.experimental.pallas import tpu as pltpu


def _round_up(x: int, m: int) -> int:
    return (x + m - 1) // m * m


def _vector_diffuser_kernel(xt_ref, enc_ref, ctxt_ref,
                            w1x_ref, w1t_ref, w1c_ref,
                            w2_ref, b2_ref, w3_ref, b3_ref,
                            out_ref):
    """One batch tile of the fused 3-layer MLP.

    Layer 1 is three narrow-K matmuls accumulated in f32 (b1 is folded into w1t
    via the ones column appended to the encoding in the wrapper).  Inputs arrive
    at their natural width and are cast to the weight dtype in-kernel (cheaper
    than a wrapper-side cast: one f32 HBM read vs read+write+re-read).
    """
    cdt = w1x_ref.dtype

    h = jnp.dot(xt_ref[...].astype(cdt), w1x_ref[...],
                preferred_element_type=jnp.float32)
    h += jnp.dot(enc_ref[...].astype(cdt), w1t_ref[...],
                 preferred_element_type=jnp.float32)
    h += jnp.dot(ctxt_ref[...].astype(cdt), w1c_ref[...],
                 preferred_element_type=jnp.float32)
    h = jnp.maximum(h, 0.1 * h)                    # LeakyReLU(0.1), f32

    h = jnp.dot(h.astype(cdt), w2_ref[...],
                preferred_element_type=jnp.float32) + b2_ref[...]
    h = jnp.maximum(h, 0.1 * h)

    out = jnp.dot(h.astype(cdt), w3_ref[...],
                  preferred_element_type=jnp.float32) + b3_ref[...]
    out_ref[...] = out.astype(out_ref.dtype)       # masked vst, true width D


def prepare_mlp_params(params, *, use_ema=False, compute_dtype=jnp.bfloat16):
    """One-time weight prep (call once, reuse the returned pytree every forward).

    * folds b1 into the time-encoding weight (extra row; wrapper appends a ones
      column to the encoding)
    * zero-pads the hidden dim to a multiple of 128 so all hidden-dim loads,
      matmuls and VPU ops are lane-dense
    * casts MXU operands to `compute_dtype`; b2/b3 stay f32 (added to f32 acc)
    """
    p = params["ema_mlp"] if use_ema else params["mlp"]
    H = p["w2"].shape[0]
    Hp = _round_up(H, 128)
    pad_h = lambda w: jnp.pad(w, ((0, 0), (0, Hp - H)))

    w1t_aug = jnp.concatenate([p["w1t"], p["b1"]], axis=0)   # (time_dim + 1, H)
    return {
        "w1x": pad_h(p["w1x"]).astype(compute_dtype),
        "w1t": pad_h(w1t_aug).astype(compute_dtype),
        "w1c": pad_h(p["w1c"]).astype(compute_dtype),
        "w2":  jnp.pad(p["w2"], ((0, Hp - H), (0, Hp - H))).astype(compute_dtype),
        "b2":  pad_h(p["b2"]).astype(jnp.float32),
        "w3":  jnp.pad(p["w3"], ((0, Hp - H), (0, 0))).astype(compute_dtype),
        "b3":  p["b3"].astype(jnp.float32),
    }


def vector_diffuser_forward(xt, t, ctxt, prepped, *, batch_tile=256,
                            vmem_limit_bytes=None):
    """Pallas forward. `prepped` comes from `prepare_mlp_params` (cached)."""
    B, D = xt.shape
    C = ctxt.shape[1]
    time_dim = prepped["w1t"].shape[0] - 1          # last row is the folded bias
    assert prepped["w3"].shape[1] == D

    # bf16 packs [16,128] per vreg -> keep the batch tile a multiple of 16.
    tb = max(16, _round_up(batch_tile, 16))
    Bp = _round_up(B, tb)

    # Cosine time encoding (f32) + ones column so layer-1's bias rides the matmul.
    freqs = jnp.exp(jnp.arange(time_dim, dtype=jnp.float32))
    enc = jnp.cos(t.astype(jnp.float32) * freqs * jnp.float32(math.pi))
    enc = jnp.concatenate([enc, jnp.ones((B, 1), jnp.float32)], axis=-1)

    if Bp != B:                                     # ragged batch: zero-pad rows
        pad = ((0, Bp - B), (0, 0))
        xt_p, enc_p, ctxt_p = jnp.pad(xt, pad), jnp.pad(enc, pad), jnp.pad(ctxt, pad)
    else:
        xt_p, enc_p, ctxt_p = xt, enc, ctxt

    # Batch-tiled activations: last dim == full array dim (no 128-padding needed).
    row = lambda last: pl.BlockSpec((tb, last), lambda i: (i, 0))
    # Resident weights/biases: constant index_map, single-buffered (one VMEM copy).
    resident = lambda arr: pl.BlockSpec(arr.shape, lambda i: (0, 0),
                                        pipeline_mode=pl.Buffered(1))

    cp_kwargs = dict(dimension_semantics=("parallel",))   # v7x shards batch axis
    if vmem_limit_bytes is not None:
        cp_kwargs["vmem_limit_bytes"] = vmem_limit_bytes

    out = pl.pallas_call(
        _vector_diffuser_kernel,
        out_shape=jax.ShapeDtypeStruct((Bp, D), xt.dtype),
        grid_spec=pltpu.PrefetchScalarGridSpec(
            num_scalar_prefetch=0,
            grid=(Bp // tb,),
            in_specs=[
                row(D),                 # xt tile
                row(time_dim + 1),      # cosine encoding (+ ones column)
                row(C),                 # ctxt tile
                resident(prepped["w1x"]),
                resident(prepped["w1t"]),
                resident(prepped["w1c"]),
                resident(prepped["w2"]),
                resident(prepped["b2"]),
                resident(prepped["w3"]),
                resident(prepped["b3"]),
            ],
            # True-width output block (masked vst). At small D this beats a
            # 128-padded slab + wrapper slice (8x less writeback); for large,
            # lane-aligned D it is already lane-dense.
            out_specs=pl.BlockSpec((tb, D), lambda i: (i, 0)),
        ),
        compiler_params=pltpu.CompilerParams(**cp_kwargs),
    )(xt_p, enc_p, ctxt_p,
      prepped["w1x"], prepped["w1t"], prepped["w1c"],
      prepped["w2"], prepped["b2"], prepped["w3"], prepped["b3"])

    return out[:B] if Bp != B else out


def init_params(key, *, inpt_dim, ctxt_dim, time_dim, hddn_dim):
    """Deterministic synthetic weights (nn.Linear-ish scaled normals)."""
    ks = jax.random.split(key, 8)
    in1 = inpt_dim + time_dim + ctxt_dim
    s1 = 1.0 / math.sqrt(in1)
    s2 = 1.0 / math.sqrt(hddn_dim)
    mlp = {
        "w1x": jax.random.normal(ks[0], (inpt_dim, hddn_dim), jnp.float32) * s1,
        "w1t": jax.random.normal(ks[1], (time_dim, hddn_dim), jnp.float32) * s1,
        "w1c": jax.random.normal(ks[2], (ctxt_dim, hddn_dim), jnp.float32) * s1,
        "b1":  jax.random.normal(ks[3], (1, hddn_dim), jnp.float32) * s1,
        "w2":  jax.random.normal(ks[4], (hddn_dim, hddn_dim), jnp.float32) * s2,
        "b2":  jax.random.normal(ks[5], (1, hddn_dim), jnp.float32) * s2,
        "w3":  jax.random.normal(ks[6], (hddn_dim, inpt_dim), jnp.float32) * s2,
        "b3":  jax.random.normal(ks[7], (1, inpt_dim), jnp.float32) * s2,
    }
    # ema_mlp = deepcopy(mlp): identical weights at init.
    return {"mlp": mlp, "ema_mlp": jax.tree_util.tree_map(lambda x: x, mlp)}


def _reference_forward(xt, t, ctxt, p):
    """Pure-JAX f32 reference of the same math, for the correctness check."""
    freqs = jnp.exp(jnp.arange(p["w1t"].shape[0], dtype=jnp.float32))
    enc = jnp.cos(t * freqs * math.pi)
    h = xt @ p["w1x"] + enc @ p["w1t"] + ctxt @ p["w1c"] + p["b1"]
    h = jnp.where(h > 0, h, 0.1 * h)
    h = h @ p["w2"] + p["b2"]
    h = jnp.where(h > 0, h, 0.1 * h)
    return h @ p["w3"] + p["b3"]


if __name__ == "__main__":
    # Small feature dims (as the module implies); B=512 with batch_tile=256 gives a
    # 2-step parallel grid (keeps both v7x TensorCores busy).
    B, INPT_DIM, CTXT_DIM, TIME_DIM, HDDN_DIM = 512, 16, 24, 8, 32

    key = jax.random.PRNGKey(0)
    k_x, k_t, k_c, k_p = jax.random.split(key, 4)
    xt = jax.random.normal(k_x, (B, INPT_DIM), jnp.float32)
    t = jax.nn.sigmoid(jax.random.normal(k_t, (B, 1), jnp.float32))
    ctxt = jax.random.normal(k_c, (B, CTXT_DIM), jnp.float32)

    params = init_params(k_p, inpt_dim=INPT_DIM, ctxt_dim=CTXT_DIM,
                         time_dim=TIME_DIM, hddn_dim=HDDN_DIM)
    ref = _reference_forward(xt, t, ctxt, params["mlp"])

    fwd = jax.jit(vector_diffuser_forward)

    # Weight prep happens ONCE per (params, dtype); reuse the pytree across calls.
    prep_f32 = prepare_mlp_params(params, compute_dtype=jnp.float32)
    prep_bf16 = prepare_mlp_params(params, compute_dtype=jnp.bfloat16)
    prep_ema = prepare_mlp_params(params, use_ema=True, compute_dtype=jnp.float32)

    # f32 operand path: tight correctness check against the pure-JAX reference.
    out_f32 = jax.block_until_ready(fwd(xt, t, ctxt, prep_f32))
    assert out_f32.shape == (B, INPT_DIM)
    assert jnp.allclose(out_f32, ref, atol=1e-4, rtol=1e-4)

    # bf16 operand path (MXU throughput on v6e/v7x): loose check (input + weight quant).
    out_bf16 = jax.block_until_ready(fwd(xt, t, ctxt, prep_bf16))
    assert out_bf16.shape == (B, INPT_DIM)
    assert float(jnp.max(jnp.abs(out_bf16 - ref))) < 0.25

    # EMA branch (identical weights at init) runs through the same kernel.
    out_ema = jax.block_until_ready(fwd(xt, t, ctxt, prep_ema))
    assert jnp.allclose(out_ema, out_f32, atol=1e-5)

    print("KERNEL_OK")
</pallas_src>

<mosaic_0001>
module attributes {stable_mosaic.version = 11 : i64} {
  func.func @_vector_diffuser_kernel(%arg0: i32, %arg1: memref<256x16xf32, #tpu.memory_space<vmem>>, %arg2: memref<256x9xf32, #tpu.memory_space<vmem>>, %arg3: memref<256x24xf32, #tpu.memory_space<vmem>>, %arg4: memref<16x128xf32, #tpu.memory_space<vmem>>, %arg5: memref<9x128xf32, #tpu.memory_space<vmem>>, %arg6: memref<24x128xf32, #tpu.memory_space<vmem>>, %arg7: memref<128x128xf32, #tpu.memory_space<vmem>>, %arg8: memref<1x128xf32, #tpu.memory_space<vmem>>, %arg9: memref<128x16xf32, #tpu.memory_space<vmem>>, %arg10: memref<1x16xf32, #tpu.memory_space<vmem>>, %arg11: memref<256x16xf32, #tpu.memory_space<vmem>>) attributes {dimension_semantics = [#tpu.dimension_semantics<parallel>], iteration_bounds = array<i64: 2>, scalar_prefetch = 0 : i64, scratch_operands = 0 : i64, tpu.core_type = #tpu.core_type<tc>, window_params = [{transform_indices = @transform_0, window_bounds = array<i64: 256, 16>}, {transform_indices = @transform_1, window_bounds = array<i64: 256, 9>}, {transform_indices = @transform_2, window_bounds = array<i64: 256, 24>}, {pipeline_mode = #tpu.pipeline_mode<synchronous>, transform_indices = @transform_3, window_bounds = array<i64: 16, 128>}, {pipeline_mode = #tpu.pipeline_mode<synchronous>, transform_indices = @transform_4, window_bounds = array<i64: 9, 128>}, {pipeline_mode = #tpu.pipeline_mode<synchronous>, transform_indices = @transform_5, window_bounds = array<i64: 24, 128>}, {pipeline_mode = #tpu.pipeline_mode<synchronous>, transform_indices = @transform_6, window_bounds = array<i64: 128, 128>}, {pipeline_mode = #tpu.pipeline_mode<synchronous>, transform_indices = @transform_7, window_bounds = array<i64: 1, 128>}, {pipeline_mode = #tpu.pipeline_mode<synchronous>, transform_indices = @transform_8, window_bounds = array<i64: 128, 16>}, {pipeline_mode = #tpu.pipeline_mode<synchronous>, transform_indices = @transform_9, window_bounds = array<i64: 1, 16>}, {transform_indices = @transform_10, window_bounds = array<i64: 256, 16>}]} {
    %c0 = arith.constant 0 : index
    %c0_0 = arith.constant 0 : index
    %0 = vector.load %arg1[%c0, %c0_0] : memref<256x16xf32, #tpu.memory_space<vmem>>, vector<256x16xf32>
    %c0_1 = arith.constant 0 : index
    %c0_2 = arith.constant 0 : index
    %1 = vector.load %arg4[%c0_1, %c0_2] : memref<16x128xf32, #tpu.memory_space<vmem>>, vector<16x128xf32>
    %cst = arith.constant dense<0.000000e+00> : vector<256x128xf32>
    %2 = tpu.matmul %0, %1, %cst {dimension_numbers = #tpu.dot_dimension_numbers<[1], [0], [0], [1], [0, 0, 1, 1], [], []>} : vector<256x16xf32>, vector<16x128xf32>, vector<256x128xf32> -> vector<256x128xf32>
    %c0_3 = arith.constant 0 : index
    %c0_4 = arith.constant 0 : index
    %3 = vector.load %arg2[%c0_3, %c0_4] : memref<256x9xf32, #tpu.memory_space<vmem>>, vector<256x9xf32>
    %c0_5 = arith.constant 0 : index
    %c0_6 = arith.constant 0 : index
    %4 = vector.load %arg5[%c0_5, %c0_6] : memref<9x128xf32, #tpu.memory_space<vmem>>, vector<9x128xf32>
    %cst_7 = arith.constant dense<0.000000e+00> : vector<256x128xf32>
    %5 = tpu.matmul %3, %4, %cst_7 {dimension_numbers = #tpu.dot_dimension_numbers<[1], [0], [0], [1], [0, 0, 1, 1], [], []>} : vector<256x9xf32>, vector<9x128xf32>, vector<256x128xf32> -> vector<256x128xf32>
    %6 = arith.addf %2, %5 : vector<256x128xf32>
    %c0_8 = arith.constant 0 : index
    %c0_9 = arith.constant 0 : index
    %7 = vector.load %arg3[%c0_8, %c0_9] : memref<256x24xf32, #tpu.memory_space<vmem>>, vector<256x24xf32>
    %c0_10 = arith.constant 0 : index
    %c0_11 = arith.constant 0 : index
    %8 = vector.load %arg6[%c0_10, %c0_11] : memref<24x128xf32, #tpu.memory_space<vmem>>, vector<24x128xf32>
    %cst_12 = arith.constant dense<0.000000e+00> : vector<256x128xf32>
    %9 = tpu.matmul %7, %8, %cst_12 {dimension_numbers = #tpu.dot_dimension_numbers<[1], [0], [0], [1], [0, 0, 1, 1], [], []>} : vector<256x24xf32>, vector<24x128xf32>, vector<256x128xf32> -> vector<256x128xf32>
    %10 = arith.addf %6, %9 : vector<256x128xf32>
    %cst_13 = arith.constant 1.000000e-01 : f32
    %11 = vector.broadcast %cst_13 : f32 to vector<256x128xf32>
    %12 = arith.mulf %11, %10 : vector<256x128xf32>
    %13 = arith.maximumf %10, %12 : vector<256x128xf32>
    %c0_14 = arith.constant 0 : index
    %c0_15 = arith.constant 0 : index
    %14 = vector.load %arg7[%c0_14, %c0_15] : memref<128x128xf32, #tpu.memory_space<vmem>>, vector<128x128xf32>
    %cst_16 = arith.constant dense<0.000000e+00> : vector<256x128xf32>
    %15 = tpu.matmul %13, %14, %cst_16 {dimension_numbers = #tpu.dot_dimension_numbers<[1], [0], [0], [1], [0, 0, 1, 1], [], []>} : vector<256x128xf32>, vector<128x128xf32>, vector<256x128xf32> -> vector<256x128xf32>
    %c0_17 = arith.constant 0 : index
    %c0_18 = arith.constant 0 : index
    %16 = vector.load %arg8[%c0_17, %c0_18] : memref<1x128xf32, #tpu.memory_space<vmem>>, vector<1x128xf32>
    %17 = vector.broadcast %16 : vector<1x128xf32> to vector<256x128xf32>
    %18 = arith.addf %15, %17 : vector<256x128xf32>
    %cst_19 = arith.constant 1.000000e-01 : f32
    %19 = vector.broadcast %cst_19 : f32 to vector<256x128xf32>
    %20 = arith.mulf %19, %18 : vector<256x128xf32>
    %21 = arith.maximumf %18, %20 : vector<256x128xf32>
    %c0_20 = arith.constant 0 : index
    %c0_21 = arith.constant 0 : index
    %22 = vector.load %arg9[%c0_20, %c0_21] : memref<128x16xf32, #tpu.memory_space<vmem>>, vector<128x16xf32>
    %cst_22 = arith.constant dense<0.000000e+00> : vector<256x16xf32>
    %23 = tpu.matmul %21, %22, %cst_22 {dimension_numbers = #tpu.dot_dimension_numbers<[1], [0], [0], [1], [0, 0, 1, 1], [], []>} : vector<256x128xf32>, vector<128x16xf32>, vector<256x16xf32> -> vector<256x16xf32>
    %c0_23 = arith.constant 0 : index
    %c0_24 = arith.constant 0 : index
    %24 = vector.load %arg10[%c0_23, %c0_24] : memref<1x16xf32, #tpu.memory_space<vmem>>, vector<1x16xf32>
    %25 = vector.broadcast %24 : vector<1x16xf32> to vector<256x16xf32>
    %26 = arith.addf %23, %25 : vector<256x16xf32>
    %c0_25 = arith.constant 0 : index
    %c0_26 = arith.constant 0 : index
    %27 = vector.load %arg11[%c0_25, %c0_26] : memref<256x16xf32, #tpu.memory_space<vmem>>, vector<256x16xf32>
    tpu.vector_store %arg11[%c0_25, %c0_26], %26 {strides = array<i32>} : memref<256x16xf32, #tpu.memory_space<vmem>>, vector<256x16xf32>,
    return
  }
  func.func @transform_0(%arg0: i32) -> (i32, i32) {
    %c0_i32 = arith.constant 0 : i32
    %c0_i32_0 = arith.constant 0 : i32
    return %arg0, %c0_i32 : i32, i32
  }
  func.func @transform_1(%arg0: i32) -> (i32, i32) {
    %c0_i32 = arith.constant 0 : i32
    %c0_i32_0 = arith.constant 0 : i32
    return %arg0, %c0_i32 : i32, i32
  }
  func.func @transform_2(%arg0: i32) -> (i32, i32) {
    %c0_i32 = arith.constant 0 : i32
    %c0_i32_0 = arith.constant 0 : i32
    return %arg0, %c0_i32 : i32, i32
  }
  func.func @transform_3(%arg0: i32) -> (i32, i32) {
    %c0_i32 = arith.constant 0 : i32
    %c0_i32_0 = arith.constant 0 : i32
    %c0_i32_1 = arith.constant 0 : i32
    return %c0_i32, %c0_i32_0 : i32, i32
  }
  func.func @transform_4(%arg0: i32) -> (i32, i32) {
    %c0_i32 = arith.constant 0 : i32
    %c0_i32_0 = arith.constant 0 : i32
    %c0_i32_1 = arith.constant 0 : i32
    return %c0_i32, %c0_i32_0 : i32, i32
  }
  func.func @transform_5(%arg0: i32) -> (i32, i32) {
    %c0_i32 = arith.constant 0 : i32
    %c0_i32_0 = arith.constant 0 : i32
    %c0_i32_1 = arith.constant 0 : i32
    return %c0_i32, %c0_i32_0 : i32, i32
  }
  func.func @transform_6(%arg0: i32) -> (i32, i32) {
    %c0_i32 = arith.constant 0 : i32
    %c0_i32_0 = arith.constant 0 : i32
    %c0_i32_1 = arith.constant 0 : i32
    return %c0_i32, %c0_i32_0 : i32, i32
  }
  func.func @transform_7(%arg0: i32) -> (i32, i32) {
    %c0_i32 = arith.constant 0 : i32
    %c0_i32_0 = arith.constant 0 : i32
    %c0_i32_1 = arith.constant 0 : i32
    return %c0_i32, %c0_i32_0 : i32, i32
  }
  func.func @transform_8(%arg0: i32) -> (i32, i32) {
    %c0_i32 = arith.constant 0 : i32
    %c0_i32_0 = arith.constant 0 : i32
    %c0_i32_1 = arith.constant 0 : i32
    return %c0_i32, %c0_i32_0 : i32, i32
  }
  func.func @transform_9(%arg0: i32) -> (i32, i32) {
    %c0_i32 = arith.constant 0 : i32
    %c0_i32_0 = arith.constant 0 : i32
    %c0_i32_1 = arith.constant 0 : i32
    return %c0_i32, %c0_i32_0 : i32, i32
  }
  func.func @transform_10(%arg0: i32) -> (i32, i32) {
    %c0_i32 = arith.constant 0 : i32
    %c0_i32_0 = arith.constant 0 : i32
    return %arg0, %c0_i32 : i32, i32
  }
}

</mosaic_0001>

<bundles_post_ra>
// kernel: vector_diffuser_forward.1
= control target key start
LH: loop header
LB: loop body
LE: loop exit
PB: predicated region body
PF: predicated region fallthrough
CT: control target
= control target key end

     0   :  { %s3096_s13 = smov 0   ;;  %s3628_s0 = inlined_call_operand.vmem [shape: f32[512,16], index: 0, kind: input, shape index: {}]   ;;  %s3629_s1 = inlined_call_operand.vmem [shape: f32[512,9], index: 1, kind: input, shape index: {}]   ;;  %s3630_s2 = inlined_call_operand.vmem [shape: f32[512,24], index: 2, kind: input, shape index: {}]   ;;  %s3631_s3 = inlined_call_operand.vmem [shape: f32[16,128], index: 3, kind: input, shape index: {}]   ;;  %s3632_s4 = inlined_call_operand.vmem [shape: f32[9,128], index: 4, kind: input, shape index: {}]   ;;  %s3633_s5 = inlined_call_operand.vmem [shape: f32[24,128], index: 5, kind: input, shape index: {}]   ;;  %s3634_s6 = inlined_call_operand.vmem [shape: f32[128,128], index: 6, kind: input, shape index: {}]   ;;  %s3635_s7 = inlined_call_operand.vmem [shape: f32[1,128], index: 7, kind: input, shape index: {}]   ;;  %s3636_s8 = inlined_call_operand.vmem [shape: f32[128,16], index: 8, kind: input, shape index: {}]   ;;  %s3637_s9 = inlined_call_operand.vmem [shape: f32[1,16], index: 9, kind: input, shape index: {}]   ;;  %s3638_s10 = inlined_call_operand.vmem [shape: f32[512,16], index: 10, kind: output, shape index: {}]  }
   0x1 LB: > { %s2248_s14 = sadd.s32 4294967295, %s3038_s13   ;;  %p2252_p0 = scmp.ge.s32.totalorder %s3038_s13, 1  ;;  %s3038_s13 = sphi %s3096_s13, %s20_s13  }
   0x2   : > { %p335_p1 = scmp.lt.s32.totalorder %s3038_s13, 3 }
   0x4   : > { %p336_p2 = pnand %p2252_p0, %p335_p1 }
   0x5   : > { %v473_v0 = vld [vmem:[%s3632_s4] sm:$0xff] (!%p336_p2)  ;;  %v474_v1 = vld [vmem:[%s3632_s4 + $0x8] sm:$0x1] (!%p336_p2)  ;;  %vm572_vm0 = vcmask (!%p336_p2), 1040384   ;;  %s2253_s19 = sshll.u32 (!%p336_p2), %s2248_s14, 5  ;;  %vm3040_vm1 = vmmov (!%p336_p2), 1  }
   0x6   : > { %339 = sbr.rel (%p336_p2) target bundleno = 830 (0x33e), region = 60  ;;  %v2879_v2 = vpack.c.bf16 (!%p336_p2), %v474_v1, %v473_v0  ;;  %vm2880_vm2 = vmpackc.low (!%p336_p2), %vm572_vm0, %vm3040_vm1  ;;  %p384_p3 = scmp.lt.s32.totalorder (!%p336_p2), %s2253_s19, 63  ;;  %v439_v3 = vld [vmem:[%s3631_s3] sm:$0xff] (!%p336_p2)  ;;  %v440_v4 = vld [vmem:[%s3631_s3 + $0x8] sm:$0xff] (!%p336_p2)  ;;  %vm475_vm3 = vcmask (!%p336_p2), 72704   ;;  %vm801_vm4 = vcmask (!%p336_p2), 130048  }
   0x7   : > { %v2885_v5 = vpack.c.bf16 (!%p336_p2), %v440_v4, %v439_v3  ;;  %v1155_v6 = vld [vmem:[%s3633_s5] sm:$0xff] (!%p336_p2)  ;;  %v1156_v7 = vld [vmem:[%s3633_s5 + $0x8] sm:$0xff] (!%p336_p2)  ;;  %v1157_v34 = vld [vmem:[%s3633_s5 + $0x10] sm:$0xff] (!%p336_p2)  ;;  %vm1158_vm5 = vcmask (!%p336_p2), 195584  }
   0x8   : > { %2881 = vmatprep.subr.msk.bf16.mxu0 (!%p336_p2), %vm2880_vm2, %v2879_v2  ;;  %2957 = vmatprep.subr.msk.bf16.mxu1 (!%p336_p2), %vm2880_vm2, %v2879_v2  ;;  %v2889_v11 = vpack.c.bf16 (!%p336_p2), %v1156_v7, %v1155_v6  ;;  %v1576_v36 = vld [vmem:[%s3634_s6] sm:$0xff] (!%p336_p2)  ;;  %v1577_v37 = vld [vmem:[%s3634_s6 + $0x8] sm:$0xff] (!%p336_p2)  ;;  %v1578_v40 = vld [vmem:[%s3634_s6 + $0x10] sm:$0xff] (!%p336_p2) }
   0x9   : > { %2884 = vmatpush3.bf16.msk.msra.mxu0 (!%p336_p2), %vm2880_vm2, %v2879_v2  ;;  %2958 = vmatpush3.bf16.msk.msra.mxu1 (!%p336_p2), %vm2880_vm2, %v2879_v2  ;;  %v2893_v39 = vpack.c.bf16 (!%p336_p2), %v1577_v37, %v1576_v36  ;;  %v1579_v41 = vld [vmem:[%s3634_s6 + $0x18] sm:$0xff] (!%p336_p2)  ;;  %v1580_v46 = vld [vmem:[%s3634_s6 + $0x20] sm:$0xff] (!%p336_p2)  ;;  %v1581_v47 = vld [vmem:[%s3634_s6 + $0x28] sm:$0xff] (!%p336_p2) }
   0xa   : > { %2886 = vmatprep.subr.bf16.mxu0 (!%p336_p2), %v2885_v5  ;;  %v2897_v45 = vpack.c.bf16 (!%p336_p2), %v1579_v41, %v1578_v40  ;;  %v2901_v51 = vpack.c.bf16 (!%p336_p2), %v1581_v47, %v1580_v46  ;;  %v1582_v53 = vld [vmem:[%s3634_s6 + $0x30] sm:$0xff] (!%p336_p2)  ;;  %v1583_v54 = vld [vmem:[%s3634_s6 + $0x38] sm:$0xff] (!%p336_p2)  ;;  %v1584_v60 = vld [vmem:[%s3634_s6 + $0x40] sm:$0xff] (!%p336_p2) }
   0xb   : > { %2894 = vmatprep.subr.bf16.mxu1 (!%p336_p2), %v2893_v39  ;;  %v2905_v58 = vpack.c.bf16 (!%p336_p2), %v1583_v54, %v1582_v53  ;;  %v1585_v61 = vld [vmem:[%s3634_s6 + $0x48] sm:$0xff] (!%p336_p2)  ;;  %v1586_v3 = vld [vmem:[%s3634_s6 + $0x50] sm:$0xff] (!%p336_p2)  ;;  %v1587_v4 = vld [vmem:[%s3634_s6 + $0x58] sm:$0xff] (!%p336_p2) }
   0xc   : > { %v2909_v1 = vpack.c.bf16 (!%p336_p2), %v1585_v61, %v1584_v60  ;;  %v2913_v7 = vpack.c.bf16 (!%p336_p2), %v1587_v4, %v1586_v3 }
   0xd   : > { %s3640_s19 = smov (!%p384_p3, %s2253_s19), 63 }
   0xe   : > { %s3122_s28 = sshll.u32 %s3640_s19, 3 }
   0xf   : > { %s3128_s11 = scalar_lea.vmem %s3629_s1, %s3122_s28  ;;  %s3169_s15 = scalar_lea.vmem %s3628_s0, %s3122_s28 }
  0x10   : > { %v441_v8 = vld [vmem:[%s3128_s11] sm:$0xff]  ;;  %v442_v9 = vld [vmem:[%s3128_s11 + $0x8] sm:$0xff]  ;;  %v443_v10 = vld [vmem:[%s3128_s11 + $0x10] sm:$0xff]  ;;  %s3309_s14 = scalar_lea.vmem %s3630_s2, %s3122_s28  ;;  %s3527_s21 = scalar_lea.vmem %s3638_s10, %s3122_s28 }
  0x11   : > { %2565 = vmatprep.mubr.msk.f32.mxu0 %vm475_vm3, %v441_v8  ;;  %v444_v12 = vld [vmem:[%s3128_s11 + $0x18] sm:$0xff]  ;;  %v445_v13 = vld [vmem:[%s3128_s11 + $0x20] sm:$0xff]  ;;  %v446_v14 = vld [vmem:[%s3128_s11 + $0x28] sm:$0xff] }
  0x12   : > { %2566 = vmatmul.mubr.msk.f32.vlgmr.msra.gmra.mrb[0].mxu0 %vm475_vm3, %v442_v9  ;;  %v447_v15 = vld [vmem:[%s3128_s11 + $0x30] sm:$0xff]  ;;  %v448_v16 = vld [vmem:[%s3128_s11 + $0x38] sm:$0xff]  ;;  %v449_v17 = vld [vmem:[%s3128_s11 + $0x40] sm:$0xff] }
  0x13   : > { %2888 = vmatpush3.bf16.msra.mxu0 %v2885_v5  ;;  %2568 = vmatprep.mubr.msk.f32.mxu0 %vm475_vm3, %v443_v10  ;;  %v450_v18 = vld [vmem:[%s3128_s11 + $0x48] sm:$0xff]  ;;  %v451_v19 = vld [vmem:[%s3128_s11 + $0x50] sm:$0xff]  ;;  %v452_v20 = vld [vmem:[%s3128_s11 + $0x58] sm:$0xff] }
  0x14   : > { %2890 = vmatprep.subr.bf16.mxu0 %v2889_v11  ;;  %v453_v21 = vld [vmem:[%s3128_s11 + $0x60] sm:$0xff]  ;;  %v458_v23 = vld [vmem:[%s3128_s11 + $0x88] sm:$0xff]  ;;  %v459_v24 = vld [vmem:[%s3128_s11 + $0x90] sm:$0xff] }
  0x15   : > { %v457_v22 = vld [vmem:[%s3128_s11 + $0x80] sm:$0xff]  ;;  %v454_v25 = vld [vmem:[%s3128_s11 + $0x68] sm:$0xff]  ;;  %v455_v26 = vld [vmem:[%s3128_s11 + $0x70] sm:$0xff] }
  0x16   : > { %2569 = vmatmul.mubr.msk.f32.gmra.mrb[2].mxu0 %vm475_vm3, %v444_v12  ;;  %2589 = vmatprep.mubr.msk.f32.mxu1 %vm475_vm3, %v457_v22  ;;  %v460_v27 = vld [vmem:[%s3128_s11 + $0x98] sm:$0xff]  ;;  %v461_v28 = vld [vmem:[%s3128_s11 + $0xa0] sm:$0xff]  ;;  %v462_v31 = vld [vmem:[%s3128_s11 + $0xa8] sm:$0xff] }
  0x17   : > { %2571 = vmatprep.mubr.msk.f32.mxu0 %vm475_vm3, %v445_v13  ;;  %2590 = vmatmul.mubr.msk.f32.vlgmr.msra.gmra.mrb[0].mxu1 %vm475_vm3, %v458_v23  ;;  %v456_v29 = vld [vmem:[%s3128_s11 + $0x78] sm:$0xff]  ;;  %v407_v30 = vld [vmem:[%s3169_s15] sm:$0xff]  ;;  %v463_v32 = vld [vmem:[%s3128_s11 + $0xb0] sm:$0xff] }
  0x18   : > { %2592 = vmatprep.mubr.msk.f32.mxu1 %vm475_vm3, %v459_v24  ;;  %v408_v33 = vld [vmem:[%s3169_s15 + $0x8] sm:$0xff]  ;;  %v409_v35 = vld [vmem:[%s3169_s15 + $0x10] sm:$0xff]  ;;  %v464_v38 = vld [vmem:[%s3128_s11 + $0xb8] sm:$0xff]  ;;  %2896 = vmatpush3.bf16.msra.mxu1 %v2893_v39 }
  0x19   : > { %v465_v42 = vld [vmem:[%s3128_s11 + $0xc0] sm:$0xff]  ;;  %v410_v43 = vld [vmem:[%s3169_s15 + $0x18] sm:$0xff]  ;;  %v466_v48 = vld [vmem:[%s3128_s11 + $0xc8] sm:$0xff]  ;;  %2898 = vmatprep.subr.bf16.mxu1 %v2897_v45 }
  0x1a   : > { %2572 = vmatmul.mubr.msk.f32.gmra.mrb[4].mxu0 %vm475_vm3, %v446_v14  ;;  %v411_v44 = vld [vmem:[%s3169_s15 + $0x20] sm:$0xff]  ;;  %v467_v49 = vld [vmem:[%s3128_s11 + $0xd0] sm:$0xff]  ;;  %v412_v50 = vld [vmem:[%s3169_s15 + $0x28] sm:$0xff] }
  0x1b   : > { %2574 = vmatprep.mubr.msk.f32.mxu0 %vm475_vm3, %v447_v15  ;;  %2593 = vmatmul.mubr.msk.f32.gmra.mrb[2].mxu1 %vm475_vm3, %v460_v27  ;;  %v413_v52 = vld [vmem:[%s3169_s15 + $0x30] sm:$0xff]  ;;  %v468_v55 = vld [vmem:[%s3128_s11 + $0xd8] sm:$0xff]  ;;  %v469_v56 = vld [vmem:[%s3128_s11 + $0xe0] sm:$0xff] }
  0x1c   : > { %2595 = vmatprep.mubr.msk.f32.mxu1 %vm475_vm3, %v461_v28  ;;  %2900 = vmatpush3.bf16.msra.mxu1 %v2897_v45  ;;  %v414_v57 = vld [vmem:[%s3169_s15 + $0x38] sm:$0xff]  ;;  %v415_v59 = vld [vmem:[%s3169_s15 + $0x40] sm:$0xff]  ;;  %v470_v62 = vld [vmem:[%s3128_s11 + $0xe8] sm:$0xff] }
  0x1d   : > { %2902 = vmatprep.subr.bf16.mxu1 %v2901_v51  ;;  %v471_v63 = vld [vmem:[%s3128_s11 + $0xf0] sm:$0xff]  ;;  %v416_v0 = vld [vmem:[%s3169_s15 + $0x48] sm:$0xff]  ;;  %v472_v5 = vld [vmem:[%s3128_s11 + $0xf8] sm:$0xff] }
  0x1e   : > { %2575 = vmatmul.mubr.msk.f32.gmra.mrb[6].mxu0 %vm475_vm3, %v448_v16  ;;  %v417_v2 = vld [vmem:[%s3169_s15 + $0x50] sm:$0xff]  ;;  %v418_v6 = vld [vmem:[%s3169_s15 + $0x58] sm:$0xff]  ;;  %v419_v8 = vld [vmem:[%s3169_s15 + $0x60] sm:$0xff] }
  0x1f   : > { %2577 = vmatprep.mubr.msk.f32.mxu0 %vm475_vm3, %v449_v17  ;;  %2596 = vmatmul.mubr.msk.f32.gmra.mrb[4].mxu1 %vm475_vm3, %v462_v31  ;;  %v1588_v9 = vld [vmem:[%s3634_s6 + $0x60] sm:$0xff]  ;;  %v1589_v10 = vld [vmem:[%s3634_s6 + $0x68] sm:$0xff]  ;;  %v421_v13 = vld [vmem:[%s3169_s15 + $0x70] sm:$0xff] }
  0x20   : > { %2598 = vmatprep.mubr.msk.f32.mxu1 %vm475_vm3, %v463_v32  ;;  %2904 = vmatpush3.bf16.msra.mxu1 %v2901_v51  ;;  %v2917_v12 = vpack.c.bf16 %v1589_v10, %v1588_v9  ;;  %v422_v14 = vld [vmem:[%s3169_s15 + $0x78] sm:$0xff]  ;;  %v423_v15 = vld [vmem:[%s3169_s15 + $0x80] sm:$0xff]  ;;  %v424_v16 = vld [vmem:[%s3169_s15 + $0x88] sm:$0xff] }
  0x21   : > { %2906 = vmatprep.subr.bf16.mxu1 %v2905_v58  ;;  %v425_v17 = vld [vmem:[%s3169_s15 + $0x90] sm:$0xff]  ;;  %v430_v22 = vld [vmem:[%s3169_s15 + $0xb8] sm:$0xff]  ;;  %v431_v23 = vld [vmem:[%s3169_s15 + $0xc0] sm:$0xff] }
  0x22   : > { %2578 = vmatmul.mubr.msk.f32.gmra.mrb[8].mxu0 %vm475_vm3, %v450_v18  ;;  %v426_v18 = vld [vmem:[%s3169_s15 + $0x98] sm:$0xff]  ;;  %v432_v24 = vld [vmem:[%s3169_s15 + $0xc8] sm:$0xff]  ;;  %v435_v27 = vld [vmem:[%s3169_s15 + $0xe0] sm:$0xff] }
  0x23   : > { %2580 = vmatprep.mubr.msk.f32.mxu0 %vm475_vm3, %v451_v19  ;;  %2599 = vmatmul.mubr.msk.f32.gmra.mrb[6].mxu1 %vm475_vm3, %v464_v38  ;;  %v427_v19 = vld [vmem:[%s3169_s15 + $0xa0] sm:$0xff]  ;;  %v436_v28 = vld [vmem:[%s3169_s15 + $0xe8] sm:$0xff]  ;;  %v1129_v37 = vld [vmem:[%s3309_s14 + $0x30] sm:$0xff] }
  0x24   : > { %2601 = vmatprep.mubr.msk.f32.mxu1 %vm475_vm3, %v465_v42  ;;  %2908 = vmatpush3.bf16.msra.mxu1 %v2905_v58  ;;  %v1123_v31 = vld [vmem:[%s3309_s14] sm:$0xff]  ;;  %v1124_v32 = vld [vmem:[%s3309_s14 + $0x8] sm:$0xff]  ;;  %v1130_v38 = vld [vmem:[%s3309_s14 + $0x38] sm:$0xff] }
  0x25   : > { %2910 = vmatprep.subr.bf16.mxu1 %v2909_v1  ;;  %v1128_v36 = vld [vmem:[%s3309_s14 + $0x28] sm:$0xff]  ;;  %v1131_v39 = vld [vmem:[%s3309_s14 + $0x40] sm:$0xff]  ;;  %v1133_v41 = vld [vmem:[%s3309_s14 + $0x50] sm:$0xff] }
  0x26   : > { %2581 = vmatmul.mubr.msk.f32.gmra.mrb[10].mxu0 %vm475_vm3, %v452_v20  ;;  %v428_v20 = vld [vmem:[%s3169_s15 + $0xa8] sm:$0xff]  ;;  %v1134_v42 = vld [vmem:[%s3309_s14 + $0x58] sm:$0xff]  ;;  %v1137_v45 = vld [vmem:[%s3309_s14 + $0x70] sm:$0xff] }
  0x27   : > { %2583 = vmatprep.mubr.msk.f32.mxu0 %vm475_vm3, %v453_v21  ;;  %2602 = vmatmul.mubr.msk.f32.gmra.mrb[8].mxu1 %vm475_vm3, %v466_v48  ;;  %v429_v21 = vld [vmem:[%s3169_s15 + $0xb0] sm:$0xff]  ;;  %v1132_v40 = vld [vmem:[%s3309_s14 + $0x48] sm:$0xff]  ;;  %v1138_v46 = vld [vmem:[%s3309_s14 + $0x78] sm:$0xff] }
  0x28   : > { %2604 = vmatprep.mubr.msk.f32.mxu1 %vm475_vm3, %v467_v49  ;;  %2912 = vmatpush3.bf16.msra.mxu1 %v2909_v1  ;;  %v1139_v47 = vld [vmem:[%s3309_s14 + $0x80] sm:$0xff]  ;;  %v1140_v48 = vld [vmem:[%s3309_s14 + $0x88] sm:$0xff]  ;;  %v1141_v49 = vld [vmem:[%s3309_s14 + $0x90] sm:$0xff] }
  0x29   : > { %2914 = vmatprep.subr.bf16.mxu1 %v2913_v7  ;;  %v1143_v51 = vld [vmem:[%s3309_s14 + $0xa0] sm:$0xff]  ;;  %v1145_v53 = vld [vmem:[%s3309_s14 + $0xb0] sm:$0xff]  ;;  %v1146_v54 = vld [vmem:[%s3309_s14 + $0xb8] sm:$0xff] }
  0x2a   : > { %2584 = vmatmul.mubr.msk.f32.gmra.mrb[12].mxu0 %vm475_vm3, %v454_v25  ;;  %v433_v25 = vld [vmem:[%s3169_s15 + $0xd0] sm:$0xff]  ;;  %v1150_v58 = vld [vmem:[%s3309_s14 + $0xd8] sm:$0xff]  ;;  %v1152_v60 = vld [vmem:[%s3309_s14 + $0xe8] sm:$0xff] }
  0x2b   : > { %2586 = vmatprep.mubr.msk.f32.mxu0 %vm475_vm3, %v455_v26  ;;  %2605 = vmatmul.mubr.msk.f32.gmra.mrb[10].mxu1 %vm475_vm3, %v468_v55  ;;  %v434_v26 = vld [vmem:[%s3169_s15 + $0xd8] sm:$0xff]  ;;  %v1147_v55 = vld [vmem:[%s3309_s14 + $0xc0] sm:$0xff]  ;;  %v1153_v61 = vld [vmem:[%s3309_s14 + $0xf0] sm:$0xff] }
  0x2c   : > { %2607 = vmatprep.mubr.msk.f32.mxu1 %vm475_vm3, %v469_v56  ;;  %2916 = vmatpush3.bf16.msra.mxu1 %v2913_v7  ;;  %v1148_v56 = vld [vmem:[%s3309_s14 + $0xc8] sm:$0xff]  ;;  %v1888_v10 = vld [vmem:[%s3636_s8] sm:$0xff] }
  0x2d   : > { %2918 = vmatprep.subr.bf16.mxu1 %v2917_v12 }
  0x2e   : > { %2587 = vmatmul.mubr.msk.f32.gmra.mrb[14].mxu0 %vm475_vm3, %v456_v29  ;;  %v437_v29 = vld [vmem:[%s3169_s15 + $0xf0] sm:$0xff] }
  0x2f   : > { %2617 = vmatprep.mubr.msk.f32.mxu0 %vm801_vm4, %v407_v30  ;;  %2608 = vmatmul.mubr.msk.f32.gmra.mrb[12].mxu1 %vm475_vm3, %v470_v62  ;;  %v438_v30 = vld [vmem:[%s3169_s15 + $0xf8] sm:$0xff] }
  0x30   : > { %2610 = vmatprep.mubr.msk.f32.mxu1 %vm475_vm3, %v471_v63  ;;  %2920 = vmatpush3.bf16.msra.mxu1 %v2917_v12  ;;  %v1154_v62 = vld [vmem:[%s3309_s14 + $0xf8] sm:$0xff]  ;;  %v1590_v63 = vld [vmem:[%s3634_s6 + $0x70] sm:$0xff] }
  0x32   : > { %2618 = vmatmul.mubr.msk.f32.vlgmr.msra.gmra.mrb[0].mxu0 %vm801_vm4, %v408_v33  ;;  %v1125_v33 = vld [vmem:[%s3309_s14 + $0x10] sm:$0xff] }
  0x33   : > { %2892 = vmatpush3.bf16.msra.mxu0 %v2889_v11  ;;  %2620 = vmatprep.mubr.msk.f32.mxu0 %vm801_vm4, %v409_v35  ;;  %v420_v11 = vld [vmem:[%s3169_s15 + $0x68] sm:$0xff]  ;;  %v1127_v35 = vld [vmem:[%s3309_s14 + $0x20] sm:$0xff] }
  0x34   : > { %2669 = vmatprep.subr.mxu0 %v1157_v34  ;;  %2611 = vmatmul.mubr.msk.f32.gmra.mrb[14].mxu1 %vm475_vm3, %v472_v5 }
  0x36   : > { %2621 = vmatmul.mubr.msk.f32.gmra.mrb[2].mxu0 %vm801_vm4, %v410_v43  ;;  %v1135_v43 = vld [vmem:[%s3309_s14 + $0x60] sm:$0xff] }
  0x37   : > { %2623 = vmatprep.mubr.msk.f32.mxu0 %vm801_vm4, %v411_v44  ;;  %2670 = vmatpush3.msra.mxu0 %v1157_v34  ;;  %v1126_v34 = vld [vmem:[%s3309_s14 + $0x18] sm:$0xff]  ;;  %v1136_v44 = vld [vmem:[%s3309_s14 + $0x68] sm:$0xff] }
  0x3a   : > { %2624 = vmatmul.mubr.msk.f32.gmra.mrb[4].mxu0 %vm801_vm4, %v412_v50  ;;  %v1142_v50 = vld [vmem:[%s3309_s14 + $0x98] sm:$0xff] }
  0x3b   : > { %2626 = vmatprep.mubr.msk.f32.mxu0 %vm801_vm4, %v413_v52  ;;  %v1144_v52 = vld [vmem:[%s3309_s14 + $0xa8] sm:$0xff] }
  0x3e   : > { %2627 = vmatmul.mubr.msk.f32.gmra.mrb[6].mxu0 %vm801_vm4, %v414_v57  ;;  %v1149_v57 = vld [vmem:[%s3309_s14 + $0xd0] sm:$0xff] }
  0x3f   : > { %2629 = vmatprep.mubr.msk.f32.mxu0 %vm801_vm4, %v415_v59  ;;  %v1151_v59 = vld [vmem:[%s3309_s14 + $0xe0] sm:$0xff] }
  0x42   : > { %2630 = vmatmul.mubr.msk.f32.gmra.mrb[8].mxu0 %vm801_vm4, %v416_v0  ;;  %v1591_v0 = vld [vmem:[%s3634_s6 + $0x78] sm:$0xff] }
  0x43   : > { %2632 = vmatprep.mubr.msk.f32.mxu0 %vm801_vm4, %v417_v2  ;;  %v2921_v1 = vpack.c.bf16 %v1591_v0, %v1590_v63 }
  0x45   : > { %2922 = vmatprep.subr.bf16.mxu1 %v2921_v1 }
  0x46   : > { %2633 = vmatmul.mubr.msk.f32.gmra.mrb[10].mxu0 %vm801_vm4, %v418_v6  ;;  %2924 = vmatpush3.bf16.msra.mxu1 %v2921_v1 }
  0x47   : > { %2635 = vmatprep.mubr.msk.f32.mxu0 %vm801_vm4, %v419_v8 }
  0x4a   : > { %2636 = vmatmul.mubr.msk.f32.gmra.mrb[12].mxu0 %vm801_vm4, %v420_v11  ;;  %v1889_v11 = vld [vmem:[%s3636_s8 + $0x8] sm:$0xff] }
  0x4b   : > { %2638 = vmatprep.mubr.msk.f32.mxu0 %vm801_vm4, %v421_v13  ;;  %v2925_v13 = vpack.c.bf16 %v1889_v11, %v1888_v10 }
  0x4d   : > { %2926 = vmatprep.subr.bf16.mxu1 %v2925_v13 }
  0x4e   : > { %2639 = vmatmul.mubr.msk.f32.gmra.mrb[14].mxu0 %vm801_vm4, %v422_v14 }
  0x4f   : > { %2641 = vmatprep.mubr.msk.f32.mxu0 %vm801_vm4, %v423_v15 }
  0x52   : > { %2642 = vmatmul.mubr.msk.f32.gmra.mrb[16].mxu0 %vm801_vm4, %v424_v16 }
  0x53   : > { %2644 = vmatprep.mubr.msk.f32.mxu0 %vm801_vm4, %v425_v17 }
  0x56   : > { %2645 = vmatmul.mubr.msk.f32.gmra.mrb[18].mxu0 %vm801_vm4, %v426_v18 }
  0x57   : > { %2647 = vmatprep.mubr.msk.f32.mxu0 %vm801_vm4, %v427_v19 }
  0x5a   : > { %2648 = vmatmul.mubr.msk.f32.gmra.mrb[20].mxu0 %vm801_vm4, %v428_v20 }
  0x5b   : > { %2650 = vmatprep.mubr.msk.f32.mxu0 %vm801_vm4, %v429_v21 }
  0x5e   : > { %2651 = vmatmul.mubr.msk.f32.gmra.mrb[22].mxu0 %vm801_vm4, %v430_v22 }
  0x5f   : > { %2653 = vmatprep.mubr.msk.f32.mxu0 %vm801_vm4, %v431_v23 }
  0x62   : > { %2654 = vmatmul.mubr.msk.f32.gmra.mrb[24].mxu0 %vm801_vm4, %v432_v24 }
  0x63   : > { %2656 = vmatprep.mubr.msk.f32.mxu0 %vm801_vm4, %v433_v25  ;;  %v1890_v25 = vld [vmem:[%s3636_s8 + $0x10] sm:$0xff] }
  0x66   : > { %2657 = vmatmul.mubr.msk.f32.gmra.mrb[26].mxu0 %vm801_vm4, %v434_v26  ;;  %v1891_v26 = vld [vmem:[%s3636_s8 + $0x18] sm:$0xff] }
  0x67   : > { %2659 = vmatprep.mubr.msk.f32.mxu0 %vm801_vm4, %v435_v27 }
  0x6a   : > { %2660 = vmatmul.mubr.msk.f32.gmra.mrb[28].mxu0 %vm801_vm4, %v436_v28 }
  0x6b   : > { %2662 = vmatprep.mubr.msk.f32.mxu0 %vm801_vm4, %v437_v29 }
  0x6e   : > { %2663 = vmatmul.mubr.msk.f32.gmra.mrb[30].mxu0 %vm801_vm4, %v438_v30 }
  0x6f   : > { %2671 = vmatprep.mubr.msk.f32.mxu0 %vm1158_vm5, %v1123_v31 }
  0x72   : > { %2672 = vmatmul.mubr.msk.f32.vlgmr.msra.gmra.mrb[0].mxu0 %vm1158_vm5, %v1124_v32  ;;  %v2929_v32 = vpack.c.bf16 %v1891_v26, %v1890_v25 }
  0x73   : > { %2674 = vmatprep.mubr.msk.f32.mxu0 %vm1158_vm5, %v1125_v33 }
  0x76   : > { %2675 = vmatmul.mubr.msk.f32.gmra.mrb[2].mxu0 %vm1158_vm5, %v1126_v34  ;;  %v1892_v34 = vld [vmem:[%s3636_s8 + $0x20] sm:$0xff] }
  0x77   : > { %2677 = vmatprep.mubr.msk.f32.mxu0 %vm1158_vm5, %v1127_v35  ;;  %v1893_v35 = vld [vmem:[%s3636_s8 + $0x28] sm:$0xff] }
  0x7a   : > { %2678 = vmatmul.mubr.msk.f32.gmra.mrb[4].mxu0 %vm1158_vm5, %v1128_v36 }
  0x7b   : > { %2680 = vmatprep.mubr.msk.f32.mxu0 %vm1158_vm5, %v1129_v37 }
  0x7e   : > { %2681 = vmatmul.mubr.msk.f32.gmra.mrb[6].mxu0 %vm1158_vm5, %v1130_v38 }
  0x7f   : > { %2683 = vmatprep.mubr.msk.f32.mxu0 %vm1158_vm5, %v1131_v39 }
  0x82   : > { %2684 = vmatmul.mubr.msk.f32.gmra.mrb[8].mxu0 %vm1158_vm5, %v1132_v40 }
  0x83   : > { %2686 = vmatprep.mubr.msk.f32.mxu0 %vm1158_vm5, %v1133_v41  ;;  %v2933_v41 = vpack.c.bf16 %v1893_v35, %v1892_v34 }
  0x86   : > { %2687 = vmatmul.mubr.msk.f32.gmra.mrb[10].mxu0 %vm1158_vm5, %v1134_v42 }
  0x87   : > { %2689 = vmatprep.mubr.msk.f32.mxu0 %vm1158_vm5, %v1135_v43  ;;  %v1894_v43 = vld [vmem:[%s3636_s8 + $0x30] sm:$0xff] }
  0x8a   : > { %2690 = vmatmul.mubr.msk.f32.gmra.mrb[12].mxu0 %vm1158_vm5, %v1136_v44  ;;  %v1895_v44 = vld [vmem:[%s3636_s8 + $0x38] sm:$0xff] }
  0x8b   : > { %2692 = vmatprep.mubr.msk.f32.mxu0 %vm1158_vm5, %v1137_v45 }
  0x8e   : > { %2693 = vmatmul.mubr.msk.f32.gmra.mrb[14].mxu0 %vm1158_vm5, %v1138_v46 }
  0x8f   : > { %2695 = vmatprep.mubr.msk.f32.mxu0 %vm1158_vm5, %v1139_v47 }
  0x92   : > { %2696 = vmatmul.mubr.msk.f32.gmra.mrb[16].mxu0 %vm1158_vm5, %v1140_v48 }
  0x93   : > { %2698 = vmatprep.mubr.msk.f32.mxu0 %vm1158_vm5, %v1141_v49 }
  0x96   : > { %2699 = vmatmul.mubr.msk.f32.gmra.mrb[18].mxu0 %vm1158_vm5, %v1142_v50  ;;  %v2937_v50 = vpack.c.bf16 %v1895_v44, %v1894_v43 }
  0x97   : > { %2701 = vmatprep.mubr.msk.f32.mxu0 %vm1158_vm5, %v1143_v51 }
  0x9a   : > { %2702 = vmatmul.mubr.msk.f32.gmra.mrb[20].mxu0 %vm1158_vm5, %v1144_v52  ;;  %v1896_v52 = vld [vmem:[%s3636_s8 + $0x40] sm:$0xff] }
  0x9b   : > { %2704 = vmatprep.mubr.msk.f32.mxu0 %vm1158_vm5, %v1145_v53  ;;  %v1897_v53 = vld [vmem:[%s3636_s8 + $0x48] sm:$0xff] }
  0x9e   : > { %2705 = vmatmul.mubr.msk.f32.gmra.mrb[22].mxu0 %vm1158_vm5, %v1146_v54 }
  0x9f   : > { %2707 = vmatprep.mubr.msk.f32.mxu0 %vm1158_vm5, %v1147_v55 }
  0xa2   : > { %2708 = vmatmul.mubr.msk.f32.gmra.mrb[24].mxu0 %vm1158_vm5, %v1148_v56 }
  0xa3   : > { %2710 = vmatprep.mubr.msk.f32.mxu0 %vm1158_vm5, %v1149_v57 }
  0xa6   : > { %2711 = vmatmul.mubr.msk.f32.gmra.mrb[26].mxu0 %vm1158_vm5, %v1150_v58 }
  0xa7   : > { %2713 = vmatprep.mubr.msk.f32.mxu0 %vm1158_vm5, %v1151_v59  ;;  %v2941_v59 = vpack.c.bf16 %v1897_v53, %v1896_v52 }
  0xaa   : > { %2714 = vmatmul.mubr.msk.f32.gmra.mrb[28].mxu0 %vm1158_vm5, %v1152_v60 }
  0xab   : > { %2716 = vmatprep.mubr.msk.f32.mxu0 %vm1158_vm5, %v1153_v61  ;;  %v1898_v61 = vld [vmem:[%s3636_s8 + $0x50] sm:$0xff] }
  0xae   : > { %2717 = vmatmul.mubr.msk.f32.gmra.mrb[30].mxu0 %vm1158_vm5, %v1154_v62  ;;  %v1899_v62 = vld [vmem:[%s3636_s8 + $0x58] sm:$0xff] }
  0xea   : > { %v3385_v2 = vpop.f32.mrb[0].mxu1 }
  0xeb   : > { %v3387_v3 = vpop.f32.mrb[1].mxu1 }
  0xee   : > { %v3389_v4 = vpop.f32.mrb[2].mxu1 }
  0xef   : > { %v3391_v5 = vpop.f32.mrb[3].mxu1 }
  0xf2   : > { %v3393_v6 = vpop.f32.mrb[4].mxu1 }
  0xf3   : > { %v3395_v7 = vpop.f32.mrb[5].mxu1 }
  0xf6   : > { %v3397_v8 = vpop.f32.mrb[6].mxu1 }
  0xf7   : > { %v3399_v9 = vpop.f32.mrb[7].mxu1 }
  0xfa   : > { %v3407_v12 = vpop.f32.mrb[8].mxu1 }
  0xfb   : > { %v3409_v14 = vpop.f32.mrb[9].mxu1 }
  0xfe   : > { %v3411_v15 = vpop.f32.mrb[10].mxu1 }
  0xff   : > { %v3413_v16 = vpop.f32.mrb[11].mxu1 }
 0x102   : > { %v3415_v17 = vpop.f32.mrb[12].mxu1 }
 0x103   : > { %v3417_v18 = vpop.f32.mrb[13].mxu1 }
 0x107   : > { %v3419_v19 = vpop.f32.mrb[14].mxu1 }
 0x108   : > { %v3421_v20 = vpop.f32.mrb[15].mxu1 }
 0x145   : > { %v2673_v21 = vpop.f32.mrb[0].mxu0 }
 0x146   : > { %v1513_v22 = vmul.f32 0.1, %v2673_v21  ;;  %v1321_v23 = vpop.f32.mrb[1].mxu0 }
 0x147   : > { %v1512_v24 = vmul.f32 0.1, %v1321_v23 }
 0x148   : > { %v1545_v29 = vmax.f32 %v2673_v21, %v1513_v22  ;;  %v1900_v22 = vld [vmem:[%s3636_s8 + $0x60] sm:$0xff] }
 0x149   : > { %v1544_v27 = vmax.f32 %v1321_v23, %v1512_v24  ;;  %v2676_v28 = vpop.f32.mrb[2].mxu0  ;;  %v1901_v23 = vld [vmem:[%s3636_s8 + $0x68] sm:$0xff] }
 0x14a   : > { %v1515_v30 = vmul.f32 0.1, %v2676_v28  ;;  %v1331_v31 = vpop.f32.mrb[3].mxu0 }
 0x14b   : > { %v1514_v33 = vmul.f32 0.1, %v1331_v31  ;;  %2751 = vmatprep.mubr.f32.mxu1 %v1544_v27 }
 0x14c   : > { %2752 = vmatmul.mubr.f32.vlgmr.msra.gmra.mrb[16].mxu1 %v1545_v29  ;;  %v1547_v38 = vmax.f32 %v2676_v28, %v1515_v30  ;;  %v2949_v29 = vpack.c.bf16 %v1901_v23, %v1900_v22 }
 0x14d   : > { %v1546_v36 = vmax.f32 %v1331_v31, %v1514_v33  ;;  %v2679_v37 = vpop.f32.mrb[4].mxu0  ;;  %2928 = vmatpush3.bf16.msra.mxu1 %v2925_v13  ;;  %v2945_v13 = vpack.c.bf16 %v1899_v62, %v1898_v61 }
 0x14e   : > { %v1517_v39 = vmul.f32 0.1, %v2679_v37  ;;  %v1341_v40 = vpop.f32.mrb[5].mxu0  ;;  %2930 = vmatprep.subr.bf16.mxu1 %v2929_v32 }
 0x14f   : > { %v1516_v42 = vmul.f32 0.1, %v1341_v40  ;;  %2754 = vmatprep.mubr.f32.mxu1 %v1546_v36 }
 0x150   : > { %2755 = vmatmul.mubr.f32.gmra.mrb[18].mxu1 %v1547_v38  ;;  %v1549_v47 = vmax.f32 %v2679_v37, %v1517_v39 }
 0x151   : > { %v1548_v45 = vmax.f32 %v1341_v40, %v1516_v42  ;;  %v2682_v46 = vpop.f32.mrb[6].mxu0  ;;  %2932 = vmatpush3.bf16.msra.mxu1 %v2929_v32 }
 0x152   : > { %v1519_v48 = vmul.f32 0.1, %v2682_v46  ;;  %v1351_v49 = vpop.f32.mrb[7].mxu0  ;;  %2934 = vmatprep.subr.bf16.mxu1 %v2933_v41 }
 0x153   : > { %v1518_v51 = vmul.f32 0.1, %v1351_v49  ;;  %2757 = vmatprep.mubr.f32.mxu1 %v1548_v45 }
 0x154   : > { %2758 = vmatmul.mubr.f32.gmra.mrb[20].mxu1 %v1549_v47  ;;  %v1551_v56 = vmax.f32 %v2682_v46, %v1519_v48 }
 0x155   : > { %v1550_v54 = vmax.f32 %v1351_v49, %v1518_v51  ;;  %v2685_v55 = vpop.f32.mrb[8].mxu0  ;;  %2936 = vmatpush3.bf16.msra.mxu1 %v2933_v41 }
 0x156   : > { %v1521_v57 = vmul.f32 0.1, %v2685_v55  ;;  %v1361_v58 = vpop.f32.mrb[9].mxu0  ;;  %2938 = vmatprep.subr.bf16.mxu1 %v2937_v50 }
 0x157   : > { %v1520_v60 = vmul.f32 0.1, %v1361_v58  ;;  %2760 = vmatprep.mubr.f32.mxu1 %v1550_v54 }
 0x158   : > { %2761 = vmatmul.mubr.f32.gmra.mrb[22].mxu1 %v1551_v56  ;;  %v1553_v1 = vmax.f32 %v2685_v55, %v1521_v57 }
 0x159   : > { %v1552_v63 = vmax.f32 %v1361_v58, %v1520_v60  ;;  %v2688_v0 = vpop.f32.mrb[10].mxu0  ;;  %2940 = vmatpush3.bf16.msra.mxu1 %v2937_v50 }
 0x15a   : > { %v1523_v10 = vmul.f32 0.1, %v2688_v0  ;;  %v1371_v11 = vpop.f32.mrb[11].mxu0  ;;  %2942 = vmatprep.subr.bf16.mxu1 %v2941_v59 }
 0x15b   : > { %v1522_v21 = vmul.f32 0.1, %v1371_v11  ;;  %2763 = vmatprep.mubr.f32.mxu1 %v1552_v63 }
 0x15c   : > { %2764 = vmatmul.mubr.f32.gmra.mrb[24].mxu1 %v1553_v1  ;;  %v1555_v26 = vmax.f32 %v2688_v0, %v1523_v10 }
 0x15d   : > { %v1554_v24 = vmax.f32 %v1371_v11, %v1522_v21  ;;  %v2691_v25 = vpop.f32.mrb[12].mxu0  ;;  %2944 = vmatpush3.bf16.msra.mxu1 %v2941_v59 }
 0x15e   : > { %v1525_v27 = vmul.f32 0.1, %v2691_v25  ;;  %v1381_v28 = vpop.f32.mrb[13].mxu0  ;;  %2946 = vmatprep.subr.bf16.mxu1 %v2945_v13 }
 0x15f   : > { %v1524_v30 = vmul.f32 0.1, %v1381_v28  ;;  %2766 = vmatprep.mubr.f32.mxu1 %v1554_v24 }
 0x160   : > { %2767 = vmatmul.mubr.f32.gmra.mrb[26].mxu1 %v1555_v26  ;;  %v1557_v33 = vmax.f32 %v2691_v25, %v1525_v27 }
 0x161   : > { %v1556_v31 = vmax.f32 %v1381_v28, %v1524_v30  ;;  %v2694_v32 = vpop.f32.mrb[14].mxu0  ;;  %2948 = vmatpush3.bf16.msra.mxu1 %v2945_v13 }
 0x162   : > { %v1527_v34 = vmul.f32 0.1, %v2694_v32  ;;  %v1391_v35 = vpop.f32.mrb[15].mxu0  ;;  %2950 = vmatprep.subr.bf16.mxu1 %v2949_v29 }
 0x163   : > { %v1526_v36 = vmul.f32 0.1, %v1391_v35  ;;  %2769 = vmatprep.mubr.f32.mxu1 %v1556_v31 }
 0x164   : > { %2770 = vmatmul.mubr.f32.gmra.mrb[28].mxu1 %v1557_v33  ;;  %v1559_v39 = vmax.f32 %v2694_v32, %v1527_v34 }
 0x165   : > { %v1558_v37 = vmax.f32 %v1391_v35, %v1526_v36  ;;  %v2697_v38 = vpop.f32.mrb[16].mxu0  ;;  %2952 = vmatpush3.bf16.msra.mxu1 %v2949_v29 }
 0x166   : > { %v2959_v40 = vadd.f32 %v2697_v38, %v3385_v2  ;;  %v1401_v41 = vpop.f32.mrb[17].mxu0 }
 0x167   : > { %v2960_v42 = vadd.f32 %v1401_v41, %v3387_v3  ;;  %2772 = vmatprep.mubr.f32.mxu1 %v1558_v37 }
 0x168   : > { %v1529_v43 = vmul.f32 0.1, %v2959_v40  ;;  %2773 = vmatmul.mubr.f32.gmra.mrb[30].mxu1 %v1559_v39 }
 0x169   : > { %v1528_v44 = vmul.f32 0.1, %v2960_v42  ;;  %v2700_v45 = vpop.f32.mrb[18].mxu0 }
 0x16a   : > { %v2961_v46 = vadd.f32 %v2700_v45, %v3389_v4  ;;  %v1411_v47 = vpop.f32.mrb[19].mxu0  ;;  %v1561_v50 = vmax.f32 %v2959_v40, %v1529_v43 }
 0x16b   : > { %v1560_v48 = vmax.f32 %v2960_v42, %v1528_v44  ;;  %v2962_v49 = vadd.f32 %v1411_v47, %v3391_v5 }
 0x16c   : > { %v1531_v51 = vmul.f32 0.1, %v2961_v46 }
 0x16d   : > { %v1530_v52 = vmul.f32 0.1, %v2962_v49  ;;  %v2703_v53 = vpop.f32.mrb[20].mxu0  ;;  %2775 = vmatprep.mubr.f32.mxu1 %v1560_v48 }
 0x16e   : > { %v2963_v2 = vadd.f32 %v2703_v53, %v3393_v6  ;;  %v1421_v54 = vpop.f32.mrb[21].mxu0  ;;  %2776 = vmatmul.mubr.f32.gmra.mrb[32].mxu1 %v1561_v50  ;;  %v1563_v56 = vmax.f32 %v2961_v46, %v1531_v51 }
 0x16f   : > { %v1562_v3 = vmax.f32 %v2962_v49, %v1530_v52  ;;  %v2964_v55 = vadd.f32 %v1421_v54, %v3395_v7 }
 0x170   : > { %v1533_v57 = vmul.f32 0.1, %v2963_v2 }
 0x171   : > { %v1532_v58 = vmul.f32 0.1, %v2964_v55  ;;  %v2706_v4 = vpop.f32.mrb[22].mxu0  ;;  %2778 = vmatprep.mubr.f32.mxu1 %v1562_v3 }
 0x172   : > { %v2965_v59 = vadd.f32 %v2706_v4, %v3397_v8  ;;  %v1431_v5 = vpop.f32.mrb[23].mxu0  ;;  %2779 = vmatmul.mubr.f32.gmra.mrb[34].mxu1 %v1563_v56  ;;  %v1565_v62 = vmax.f32 %v2963_v2, %v1533_v57 }
 0x173   : > { %v1564_v60 = vmax.f32 %v2964_v55, %v1532_v58  ;;  %v2966_v61 = vadd.f32 %v1431_v5, %v3399_v9 }
 0x174   : > { %v1535_v63 = vmul.f32 0.1, %v2965_v59 }
 0x175   : > { %v1534_v6 = vmul.f32 0.1, %v2966_v61  ;;  %v2709_v0 = vpop.f32.mrb[24].mxu0  ;;  %2781 = vmatprep.mubr.f32.mxu1 %v1564_v60 }
 0x176   : > { %v2967_v1 = vadd.f32 %v2709_v0, %v3407_v12  ;;  %v1441_v7 = vpop.f32.mrb[25].mxu0  ;;  %2782 = vmatmul.mubr.f32.gmra.mrb[36].mxu1 %v1565_v62  ;;  %v1567_v13 = vmax.f32 %v2965_v59, %v1535_v63 }
 0x177   : > { %v1566_v10 = vmax.f32 %v2966_v61, %v1534_v6  ;;  %v2968_v11 = vadd.f32 %v1441_v7, %v3409_v14 }
 0x178   : > { %v1537_v21 = vmul.f32 0.1, %v2967_v1 }
 0x179   : > { %v1536_v8 = vmul.f32 0.1, %v2968_v11  ;;  %v2712_v22 = vpop.f32.mrb[26].mxu0  ;;  %2784 = vmatprep.mubr.f32.mxu1 %v1566_v10 }
 0x17a   : > { %v2969_v23 = vadd.f32 %v2712_v22, %v3411_v15  ;;  %v1451_v9 = vpop.f32.mrb[27].mxu0  ;;  %2785 = vmatmul.mubr.f32.gmra.mrb[38].mxu1 %v1567_v13  ;;  %v1569_v26 = vmax.f32 %v2967_v1, %v1537_v21 }
 0x17b   : > { %v1568_v24 = vmax.f32 %v2968_v11, %v1536_v8  ;;  %v2970_v25 = vadd.f32 %v1451_v9, %v3413_v16 }
 0x17c   : > { %v1539_v27 = vmul.f32 0.1, %v2969_v23 }
 0x17d   : > { %v1538_v12 = vmul.f32 0.1, %v2970_v25  ;;  %v2715_v28 = vpop.f32.mrb[28].mxu0  ;;  %2787 = vmatprep.mubr.f32.mxu1 %v1568_v24 }
 0x17e   : > { %v2971_v29 = vadd.f32 %v2715_v28, %v3415_v17  ;;  %v1461_v14 = vpop.f32.mrb[29].mxu0  ;;  %2788 = vmatmul.mubr.f32.gmra.mrb[40].mxu1 %v1569_v26  ;;  %v1571_v32 = vmax.f32 %v2969_v23, %v1539_v27 }
 0x17f   : > { %v1570_v30 = vmax.f32 %v2970_v25, %v1538_v12  ;;  %v2972_v31 = vadd.f32 %v1461_v14, %v3417_v18  ;;  %v1902_v18 = vld [vmem:[%s3636_s8 + $0x70] sm:$0xff] }
 0x180   : > { %v1541_v33 = vmul.f32 0.1, %v2971_v29 }
 0x181   : > { %v1540_v15 = vmul.f32 0.1, %v2972_v31  ;;  %v2718_v34 = vpop.f32.mrb[30].mxu0  ;;  %2790 = vmatprep.mubr.f32.mxu1 %v1570_v30 }
 0x182   : > { %v2973_v35 = vadd.f32 %v2718_v34, %v3419_v19  ;;  %v1471_v16 = vpop.f32.mrb[31].mxu0  ;;  %2791 = vmatmul.mubr.f32.gmra.mrb[42].mxu1 %v1571_v32  ;;  %v1573_v38 = vmax.f32 %v2971_v29, %v1541_v33  ;;  %v1903_v19 = vld [vmem:[%s3636_s8 + $0x78] sm:$0xff] }
 0x183   : > { %v1572_v36 = vmax.f32 %v2972_v31, %v1540_v15  ;;  %v2974_v37 = vadd.f32 %v1471_v16, %v3421_v20  ;;  %v2953_v42 = vpack.c.bf16 %v1903_v19, %v1902_v18  ;;  %v3484_v20 = vld [vmem:[%s3635_s7] ss:$0 sm:$0xff] }
 0x184   : > { %v1543_v39 = vmul.f32 0.1, %v2973_v35 }
 0x185   : > { %v1542_v17 = vmul.f32 0.1, %v2974_v37  ;;  %2793 = vmatprep.mubr.f32.mxu1 %v1572_v36  ;;  %2954 = vmatprep.subr.bf16.mxu1 %v2953_v42 }
 0x186   : > { %2794 = vmatmul.mubr.f32.gmra.mrb[44].mxu1 %v1573_v38  ;;  %v1575_v41 = vmax.f32 %v2973_v35, %v1543_v39 }
 0x187   : > { %v1574_v40 = vmax.f32 %v2974_v37, %v1542_v17  ;;  %2956 = vmatpush3.bf16.msra.mxu1 %v2953_v42 }
 0x189   : > { %2796 = vmatprep.mubr.f32.mxu1 %v1574_v40 }
 0x18a   : > { %2797 = vmatmul.mubr.f32.gmra.mrb[46].mxu1 %v1575_v41 }
 0x21f   : > { %v2753_v43 = vpop.f32.mrb[16].mxu1 }
 0x220   : > { %v1671_v44 = vadd.f32 %v2753_v43, %v3484_v20  ;;  %v1665_v45 = vpop.f32.mrb[17].mxu1 }
 0x221   : > { %v1666_v46 = vadd.f32 %v3484_v20, %v1665_v45 }
 0x222   : > { %v1825_v47 = vmul.f32 0.1, %v1671_v44 }
 0x223   : > { %v1824_v48 = vmul.f32 0.1, %v1666_v46  ;;  %v2756_v49 = vpop.f32.mrb[18].mxu1 }
 0x224   : > { %v1681_v50 = vadd.f32 %v2756_v49, %v3484_v20  ;;  %v1675_v51 = vpop.f32.mrb[19].mxu1  ;;  %v1857_v2 = vmax.f32 %v1671_v44, %v1825_v47 }
 0x225   : > { %v1856_v52 = vmax.f32 %v1666_v46, %v1824_v48  ;;  %v1676_v53 = vadd.f32 %v3484_v20, %v1675_v51 }
 0x226   : > { %v1827_v54 = vmul.f32 0.1, %v1681_v50 }
 0x227   : > { %v1826_v3 = vmul.f32 0.1, %v1676_v53  ;;  %v2759_v55 = vpop.f32.mrb[20].mxu1  ;;  %2831 = vmatprep.mubr.f32.mxu1 %v1856_v52 }
 0x228   : > { %v1691_v56 = vadd.f32 %v2759_v55, %v3484_v20  ;;  %v1685_v57 = vpop.f32.mrb[21].mxu1  ;;  %2832 = vmatmul.mubr.f32.vlgmr.msra.gmra.mrb[48].mxu1 %v1857_v2  ;;  %v1859_v59 = vmax.f32 %v1681_v50, %v1827_v54 }
 0x229   : > { %v1858_v58 = vmax.f32 %v1676_v53, %v1826_v3  ;;  %v1686_v4 = vadd.f32 %v3484_v20, %v1685_v57 }
 0x22a   : > { %v1829_v5 = vmul.f32 0.1, %v1691_v56 }
 0x22b   : > { %v1828_v60 = vmul.f32 0.1, %v1686_v4  ;;  %v2762_v61 = vpop.f32.mrb[22].mxu1  ;;  %2834 = vmatprep.mubr.f32.mxu1 %v1858_v58 }
 0x22c   : > { %v1701_v62 = vadd.f32 %v2762_v61, %v3484_v20  ;;  %v1695_v63 = vpop.f32.mrb[23].mxu1  ;;  %2835 = vmatmul.mubr.f32.gmra.mrb[50].mxu1 %v1859_v59  ;;  %v1861_v1 = vmax.f32 %v1691_v56, %v1829_v5 }
 0x22d   : > { %v1860_v6 = vmax.f32 %v1686_v4, %v1828_v60  ;;  %v1696_v0 = vadd.f32 %v3484_v20, %v1695_v63 }
 0x22e   : > { %v1831_v7 = vmul.f32 0.1, %v1701_v62 }
 0x22f   : > { %v1830_v10 = vmul.f32 0.1, %v1696_v0  ;;  %v2765_v11 = vpop.f32.mrb[24].mxu1  ;;  %2837 = vmatprep.mubr.f32.mxu1 %v1860_v6 }
 0x230   : > { %v1711_v13 = vadd.f32 %v2765_v11, %v3484_v20  ;;  %v1705_v21 = vpop.f32.mrb[25].mxu1  ;;  %2838 = vmatmul.mubr.f32.gmra.mrb[52].mxu1 %v1861_v1  ;;  %v1863_v23 = vmax.f32 %v1701_v62, %v1831_v7 }
 0x231   : > { %v1862_v8 = vmax.f32 %v1696_v0, %v1830_v10  ;;  %v1706_v22 = vadd.f32 %v3484_v20, %v1705_v21 }
 0x232   : > { %v1833_v9 = vmul.f32 0.1, %v1711_v13 }
 0x233   : > { %v1832_v24 = vmul.f32 0.1, %v1706_v22  ;;  %v2768_v25 = vpop.f32.mrb[26].mxu1  ;;  %2840 = vmatprep.mubr.f32.mxu1 %v1862_v8 }
 0x234   : > { %v1721_v26 = vadd.f32 %v2768_v25, %v3484_v20  ;;  %v1715_v27 = vpop.f32.mrb[27].mxu1  ;;  %2841 = vmatmul.mubr.f32.gmra.mrb[54].mxu1 %v1863_v23  ;;  %v1865_v29 = vmax.f32 %v1711_v13, %v1833_v9 }
 0x235   : > { %v1864_v12 = vmax.f32 %v1706_v22, %v1832_v24  ;;  %v1716_v28 = vadd.f32 %v3484_v20, %v1715_v27 }
 0x236   : > { %v1835_v14 = vmul.f32 0.1, %v1721_v26 }
 0x237   : > { %v1834_v30 = vmul.f32 0.1, %v1716_v28  ;;  %v2771_v31 = vpop.f32.mrb[28].mxu1  ;;  %2843 = vmatprep.mubr.f32.mxu1 %v1864_v12 }
 0x238   : > { %v1731_v32 = vadd.f32 %v2771_v31, %v3484_v20  ;;  %v1725_v33 = vpop.f32.mrb[29].mxu1  ;;  %2844 = vmatmul.mubr.f32.gmra.mrb[56].mxu1 %v1865_v29  ;;  %v1867_v35 = vmax.f32 %v1721_v26, %v1835_v14 }
 0x239   : > { %v1866_v15 = vmax.f32 %v1716_v28, %v1834_v30  ;;  %v1726_v34 = vadd.f32 %v3484_v20, %v1725_v33 }
 0x23a   : > { %v1837_v16 = vmul.f32 0.1, %v1731_v32 }
 0x23b   : > { %v1836_v36 = vmul.f32 0.1, %v1726_v34  ;;  %v2774_v37 = vpop.f32.mrb[30].mxu1  ;;  %2846 = vmatprep.mubr.f32.mxu1 %v1866_v15 }
 0x23c   : > { %v1741_v38 = vadd.f32 %v2774_v37, %v3484_v20  ;;  %v1735_v39 = vpop.f32.mrb[31].mxu1  ;;  %2847 = vmatmul.mubr.f32.gmra.mrb[58].mxu1 %v1867_v35  ;;  %v1869_v41 = vmax.f32 %v1731_v32, %v1837_v16 }
 0x23d   : > { %v1868_v17 = vmax.f32 %v1726_v34, %v1836_v36  ;;  %v1736_v40 = vadd.f32 %v3484_v20, %v1735_v39 }
 0x23e   : > { %v1839_v18 = vmul.f32 0.1, %v1741_v38 }
 0x23f   : > { %v1838_v19 = vmul.f32 0.1, %v1736_v40  ;;  %2849 = vmatprep.mubr.f32.mxu1 %v1868_v17 }
 0x240   : > { %2850 = vmatmul.mubr.f32.gmra.mrb[60].mxu1 %v1869_v41  ;;  %v1871_v44 = vmax.f32 %v1741_v38, %v1839_v18 }
 0x241   : > { %v1870_v42 = vmax.f32 %v1736_v40, %v1838_v19  ;;  %v2777_v43 = vpop.f32.mrb[32].mxu1 }
 0x242   : > { %v1751_v45 = vadd.f32 %v2777_v43, %v3484_v20  ;;  %v1745_v46 = vpop.f32.mrb[33].mxu1 }
 0x243   : > { %v1746_v47 = vadd.f32 %v3484_v20, %v1745_v46  ;;  %2852 = vmatprep.mubr.f32.mxu1 %v1870_v42 }
 0x244   : > { %v1841_v48 = vmul.f32 0.1, %v1751_v45  ;;  %2853 = vmatmul.mubr.f32.gmra.mrb[62].mxu1 %v1871_v44 }
 0x245   : > { %v1840_v49 = vmul.f32 0.1, %v1746_v47  ;;  %v2780_v50 = vpop.f32.mrb[34].mxu1 }
 0x246   : > { %v1761_v51 = vadd.f32 %v2780_v50, %v3484_v20  ;;  %v1755_v52 = vpop.f32.mrb[35].mxu1  ;;  %v1873_v54 = vmax.f32 %v1751_v45, %v1841_v48  ;;  %v3521_v45 = vld [vmem:[%s3637_s9] ss:$0 sm:$0xff] }
 0x247   : > { %v1872_v53 = vmax.f32 %v1746_v47, %v1840_v49  ;;  %v1756_v2 = vadd.f32 %v3484_v20, %v1755_v52 }
 0x248   : > { %v1843_v3 = vmul.f32 0.1, %v1761_v51 }
 0x249   : > { %v1842_v55 = vmul.f32 0.1, %v1756_v2  ;;  %v2783_v56 = vpop.f32.mrb[36].mxu1  ;;  %2855 = vmatprep.mubr.f32.mxu1 %v1872_v53 }
 0x24a   : > { %v1771_v57 = vadd.f32 %v2783_v56, %v3484_v20  ;;  %v1765_v58 = vpop.f32.mrb[37].mxu1  ;;  %2856 = vmatmul.mubr.f32.gmra.mrb[64].mxu1 %v1873_v54  ;;  %v1875_v5 = vmax.f32 %v1761_v51, %v1843_v3 }
 0x24b   : > { %v1874_v4 = vmax.f32 %v1756_v2, %v1842_v55  ;;  %v1766_v59 = vadd.f32 %v3484_v20, %v1765_v58 }
 0x24c   : > { %v1845_v60 = vmul.f32 0.1, %v1771_v57 }
 0x24d   : > { %v1844_v61 = vmul.f32 0.1, %v1766_v59  ;;  %v2786_v62 = vpop.f32.mrb[38].mxu1  ;;  %2858 = vmatprep.mubr.f32.mxu1 %v1874_v4 }
 0x24e   : > { %v1781_v63 = vadd.f32 %v2786_v62, %v3484_v20  ;;  %v1775_v6 = vpop.f32.mrb[39].mxu1  ;;  %2859 = vmatmul.mubr.f32.gmra.mrb[66].mxu1 %v1875_v5  ;;  %v1877_v7 = vmax.f32 %v1771_v57, %v1845_v60 }
 0x24f   : > { %v1876_v0 = vmax.f32 %v1766_v59, %v1844_v61  ;;  %v1776_v1 = vadd.f32 %v3484_v20, %v1775_v6 }
 0x250   : > { %v1847_v10 = vmul.f32 0.1, %v1781_v63 }
 0x251   : > { %v1846_v11 = vmul.f32 0.1, %v1776_v1  ;;  %v2789_v13 = vpop.f32.mrb[40].mxu1  ;;  %2861 = vmatprep.mubr.f32.mxu1 %v1876_v0 }
 0x252   : > { %v1791_v21 = vadd.f32 %v2789_v13, %v3484_v20  ;;  %v1785_v8 = vpop.f32.mrb[41].mxu1  ;;  %2862 = vmatmul.mubr.f32.gmra.mrb[68].mxu1 %v1877_v7  ;;  %v1879_v9 = vmax.f32 %v1781_v63, %v1847_v10 }
 0x253   : > { %v1878_v22 = vmax.f32 %v1776_v1, %v1846_v11  ;;  %v1786_v23 = vadd.f32 %v3484_v20, %v1785_v8 }
 0x254   : > { %v1849_v24 = vmul.f32 0.1, %v1791_v21 }
 0x255   : > { %v1848_v25 = vmul.f32 0.1, %v1786_v23  ;;  %v2792_v26 = vpop.f32.mrb[42].mxu1  ;;  %2864 = vmatprep.mubr.f32.mxu1 %v1878_v22 }
 0x256   : > { %v1801_v27 = vadd.f32 %v2792_v26, %v3484_v20  ;;  %v1795_v12 = vpop.f32.mrb[43].mxu1  ;;  %2865 = vmatmul.mubr.f32.gmra.mrb[70].mxu1 %v1879_v9  ;;  %v1881_v14 = vmax.f32 %v1791_v21, %v1849_v24 }
 0x257   : > { %v1880_v28 = vmax.f32 %v1786_v23, %v1848_v25  ;;  %v1796_v29 = vadd.f32 %v3484_v20, %v1795_v12 }
 0x258   : > { %v1851_v30 = vmul.f32 0.1, %v1801_v27 }
 0x259   : > { %v1850_v31 = vmul.f32 0.1, %v1796_v29  ;;  %v2795_v32 = vpop.f32.mrb[44].mxu1  ;;  %2867 = vmatprep.mubr.f32.mxu1 %v1880_v28 }
 0x25a   : > { %v1811_v33 = vadd.f32 %v2795_v32, %v3484_v20  ;;  %v1805_v15 = vpop.f32.mrb[45].mxu1  ;;  %2868 = vmatmul.mubr.f32.gmra.mrb[72].mxu1 %v1881_v14  ;;  %v1883_v16 = vmax.f32 %v1801_v27, %v1851_v30 }
 0x25b   : > { %v1882_v34 = vmax.f32 %v1796_v29, %v1850_v31  ;;  %v1806_v35 = vadd.f32 %v3484_v20, %v1805_v15 }
 0x25c   : > { %v1853_v36 = vmul.f32 0.1, %v1811_v33 }
 0x25d   : > { %v1852_v37 = vmul.f32 0.1, %v1806_v35  ;;  %v2798_v38 = vpop.f32.mrb[46].mxu1  ;;  %2870 = vmatprep.mubr.f32.mxu1 %v1882_v34 }
 0x25e   : > { %v1821_v39 = vadd.f32 %v2798_v38, %v3484_v20  ;;  %v1815_v17 = vpop.f32.mrb[47].mxu1  ;;  %2871 = vmatmul.mubr.f32.gmra.mrb[74].mxu1 %v1883_v16  ;;  %v1885_v18 = vmax.f32 %v1811_v33, %v1853_v36 }
 0x25f   : > { %v1884_v40 = vmax.f32 %v1806_v35, %v1852_v37  ;;  %v1816_v41 = vadd.f32 %v3484_v20, %v1815_v17 }
 0x260   : > { %v1855_v19 = vmul.f32 0.1, %v1821_v39 }
 0x261   : > { %v1854_v42 = vmul.f32 0.1, %v1816_v41  ;;  %2873 = vmatprep.mubr.f32.mxu1 %v1884_v40 }
 0x262   : > { %2874 = vmatmul.mubr.f32.gmra.mrb[76].mxu1 %v1885_v18  ;;  %v1887_v44 = vmax.f32 %v1821_v39, %v1855_v19 }
 0x263   : > { %v1886_v43 = vmax.f32 %v1816_v41, %v1854_v42 }
 0x265   : > { %2876 = vmatprep.mubr.f32.mxu1 %v1886_v43 }
 0x266   : > { %2877 = vmatmul.mubr.f32.gmra.mrb[78].mxu1 %v1887_v44 }
 0x2fb   : > { %v2833_v20 = vpop.f32.mrb[48].mxu1 }
 0x2fc   : > { %v1983_v46 = vadd.f32 %v2833_v20, %v3521_v45  ;;  %v1977_v47 = vpop.f32.mrb[49].mxu1 }
 0x2fd   : > { %v1978_v48 = vadd.f32 %v3521_v45, %v1977_v47 }
 0x2fe   : > { %2137 = vst.msk [vmem:[%s3527_s21 + $0x8] sm:$0xff] %vm801_vm4, %v1983_v46 }
 0x2ff   : > { %2136 = vst.msk [vmem:[%s3527_s21] sm:$0xff] %vm801_vm4, %v1978_v48  ;;  %v2836_v49 = vpop.f32.mrb[50].mxu1 }
 0x300   : > { %v1993_v50 = vadd.f32 %v2836_v49, %v3521_v45  ;;  %v1987_v51 = vpop.f32.mrb[51].mxu1 }
 0x301   : > { %v1988_v52 = vadd.f32 %v3521_v45, %v1987_v51 }
 0x302   : > { %2139 = vst.msk [vmem:[%s3527_s21 + $0x18] sm:$0xff] %vm801_vm4, %v1993_v50 }
 0x303   : > { %2138 = vst.msk [vmem:[%s3527_s21 + $0x10] sm:$0xff] %vm801_vm4, %v1988_v52  ;;  %v2839_v53 = vpop.f32.mrb[52].mxu1 }
 0x304   : > { %v2003_v2 = vadd.f32 %v2839_v53, %v3521_v45  ;;  %v1997_v54 = vpop.f32.mrb[53].mxu1 }
 0x305   : > { %v1998_v3 = vadd.f32 %v3521_v45, %v1997_v54 }
 0x306   : > { %2141 = vst.msk [vmem:[%s3527_s21 + $0x28] sm:$0xff] %vm801_vm4, %v2003_v2 }
 0x307   : > { %2140 = vst.msk [vmem:[%s3527_s21 + $0x20] sm:$0xff] %vm801_vm4, %v1998_v3  ;;  %v2842_v55 = vpop.f32.mrb[54].mxu1 }
 0x308   : > { %v2013_v56 = vadd.f32 %v2842_v55, %v3521_v45  ;;  %v2007_v57 = vpop.f32.mrb[55].mxu1 }
 0x309   : > { %v2008_v58 = vadd.f32 %v3521_v45, %v2007_v57 }
 0x30a   : > { %2143 = vst.msk [vmem:[%s3527_s21 + $0x38] sm:$0xff] %vm801_vm4, %v2013_v56 }
 0x30b   : > { %2142 = vst.msk [vmem:[%s3527_s21 + $0x30] sm:$0xff] %vm801_vm4, %v2008_v58  ;;  %v2845_v4 = vpop.f32.mrb[56].mxu1 }
 0x30c   : > { %v2023_v59 = vadd.f32 %v2845_v4, %v3521_v45  ;;  %v2017_v5 = vpop.f32.mrb[57].mxu1 }
 0x30d   : > { %v2018_v60 = vadd.f32 %v3521_v45, %v2017_v5 }
 0x30e   : > { %2145 = vst.msk [vmem:[%s3527_s21 + $0x48] sm:$0xff] %vm801_vm4, %v2023_v59 }
 0x30f   : > { %2144 = vst.msk [vmem:[%s3527_s21 + $0x40] sm:$0xff] %vm801_vm4, %v2018_v60  ;;  %v2848_v61 = vpop.f32.mrb[58].mxu1 }
 0x310   : > { %v2033_v62 = vadd.f32 %v2848_v61, %v3521_v45  ;;  %v2027_v63 = vpop.f32.mrb[59].mxu1 }
 0x311   : > { %v2028_v6 = vadd.f32 %v3521_v45, %v2027_v63 }
 0x312   : > { %2147 = vst.msk [vmem:[%s3527_s21 + $0x58] sm:$0xff] %vm801_vm4, %v2033_v62 }
 0x313   : > { %2146 = vst.msk [vmem:[%s3527_s21 + $0x50] sm:$0xff] %vm801_vm4, %v2028_v6  ;;  %v2851_v0 = vpop.f32.mrb[60].mxu1 }
 0x314   : > { %v2043_v1 = vadd.f32 %v2851_v0, %v3521_v45  ;;  %v2037_v7 = vpop.f32.mrb[61].mxu1 }
 0x315   : > { %v2038_v10 = vadd.f32 %v3521_v45, %v2037_v7 }
 0x316   : > { %2149 = vst.msk [vmem:[%s3527_s21 + $0x68] sm:$0xff] %vm801_vm4, %v2043_v1 }
 0x317   : > { %2148 = vst.msk [vmem:[%s3527_s21 + $0x60] sm:$0xff] %vm801_vm4, %v2038_v10  ;;  %v2854_v11 = vpop.f32.mrb[62].mxu1 }
 0x318   : > { %v2053_v13 = vadd.f32 %v2854_v11, %v3521_v45  ;;  %v2047_v21 = vpop.f32.mrb[63].mxu1 }
 0x319   : > { %v2048_v8 = vadd.f32 %v3521_v45, %v2047_v21 }
 0x31a   : > { %2151 = vst.msk [vmem:[%s3527_s21 + $0x78] sm:$0xff] %vm801_vm4, %v2053_v13 }
 0x31b   : > { %2150 = vst.msk [vmem:[%s3527_s21 + $0x70] sm:$0xff] %vm801_vm4, %v2048_v8 }
 0x31d   : > { %v2857_v22 = vpop.f32.mrb[64].mxu1 }
 0x31e   : > { %v2063_v23 = vadd.f32 %v2857_v22, %v3521_v45  ;;  %v2057_v9 = vpop.f32.mrb[65].mxu1 }
 0x31f   : > { %v2058_v24 = vadd.f32 %v3521_v45, %v2057_v9 }
 0x320   : > { %2153 = vst.msk [vmem:[%s3527_s21 + $0x88] sm:$0xff] %vm801_vm4, %v2063_v23 }
 0x321   : > { %2152 = vst.msk [vmem:[%s3527_s21 + $0x80] sm:$0xff] %vm801_vm4, %v2058_v24  ;;  %v2860_v25 = vpop.f32.mrb[66].mxu1 }
 0x322   : > { %v2073_v26 = vadd.f32 %v2860_v25, %v3521_v45  ;;  %v2067_v27 = vpop.f32.mrb[67].mxu1 }
 0x323   : > { %v2068_v12 = vadd.f32 %v3521_v45, %v2067_v27 }
 0x324   : > { %2155 = vst.msk [vmem:[%s3527_s21 + $0x98] sm:$0xff] %vm801_vm4, %v2073_v26 }
 0x325   : > { %2154 = vst.msk [vmem:[%s3527_s21 + $0x90] sm:$0xff] %vm801_vm4, %v2068_v12  ;;  %v2863_v28 = vpop.f32.mrb[68].mxu1 }
 0x326   : > { %v2083_v29 = vadd.f32 %v2863_v28, %v3521_v45  ;;  %v2077_v14 = vpop.f32.mrb[69].mxu1 }
 0x327   : > { %v2078_v30 = vadd.f32 %v3521_v45, %v2077_v14 }
 0x328   : > { %2157 = vst.msk [vmem:[%s3527_s21 + $0xa8] sm:$0xff] %vm801_vm4, %v2083_v29 }
 0x329   : > { %2156 = vst.msk [vmem:[%s3527_s21 + $0xa0] sm:$0xff] %vm801_vm4, %v2078_v30  ;;  %v2866_v31 = vpop.f32.mrb[70].mxu1 }
 0x32a   : > { %v2093_v32 = vadd.f32 %v2866_v31, %v3521_v45  ;;  %v2087_v33 = vpop.f32.mrb[71].mxu1 }
 0x32b   : > { %v2088_v15 = vadd.f32 %v3521_v45, %v2087_v33 }
 0x32c   : > { %2159 = vst.msk [vmem:[%s3527_s21 + $0xb8] sm:$0xff] %vm801_vm4, %v2093_v32 }
 0x32d   : > { %2158 = vst.msk [vmem:[%s3527_s21 + $0xb0] sm:$0xff] %vm801_vm4, %v2088_v15  ;;  %v2869_v34 = vpop.f32.mrb[72].mxu1 }
 0x32e   : > { %v2103_v35 = vadd.f32 %v2869_v34, %v3521_v45  ;;  %v2097_v16 = vpop.f32.mrb[73].mxu1 }
 0x32f   : > { %v2098_v36 = vadd.f32 %v3521_v45, %v2097_v16 }
 0x330   : > { %2161 = vst.msk [vmem:[%s3527_s21 + $0xc8] sm:$0xff] %vm801_vm4, %v2103_v35 }
 0x331   : > { %2160 = vst.msk [vmem:[%s3527_s21 + $0xc0] sm:$0xff] %vm801_vm4, %v2098_v36  ;;  %v2872_v37 = vpop.f32.mrb[74].mxu1 }
 0x332   : > { %v2113_v38 = vadd.f32 %v2872_v37, %v3521_v45  ;;  %v2107_v39 = vpop.f32.mrb[75].mxu1 }
 0x333   : > { %v2108_v17 = vadd.f32 %v3521_v45, %v2107_v39 }
 0x334   : > { %2163 = vst.msk [vmem:[%s3527_s21 + $0xd8] sm:$0xff] %vm801_vm4, %v2113_v38 }
 0x335   : > { %2162 = vst.msk [vmem:[%s3527_s21 + $0xd0] sm:$0xff] %vm801_vm4, %v2108_v17  ;;  %v2875_v40 = vpop.f32.mrb[76].mxu1 }
 0x336   : > { %v2123_v41 = vadd.f32 %v2875_v40, %v3521_v45  ;;  %v2117_v18 = vpop.f32.mrb[77].mxu1 }
 0x337   : > { %v2118_v19 = vadd.f32 %v3521_v45, %v2117_v18 }
 0x338   : > { %2165 = vst.msk [vmem:[%s3527_s21 + $0xe8] sm:$0xff] %vm801_vm4, %v2123_v41 }
 0x339   : > { %2164 = vst.msk [vmem:[%s3527_s21 + $0xe0] sm:$0xff] %vm801_vm4, %v2118_v19  ;;  %v2878_v42 = vpop.f32.mrb[78].mxu1 }
 0x33a   : > { %v2133_v43 = vadd.f32 %v2878_v42, %v3521_v45  ;;  %v2127_v44 = vpop.f32.mrb[79].mxu1 }
 0x33b   : > { %v2128_v20 = vadd.f32 %v3521_v45, %v2127_v44 }
 0x33c   : > { %2167 = vst.msk [vmem:[%s3527_s21 + $0xf8] sm:$0xff] %vm801_vm4, %v2133_v43 }
 0x33d   : > { %2166 = vst.msk [vmem:[%s3527_s21 + $0xf0] sm:$0xff] %vm801_vm4, %v2128_v20 }
 0x33e PF: > { %s20_s13 = sadd.s32 1, %s3038_s13  }
 0x33f   : > { %p17_p4 = scmp.ge.s32.totalorder %s20_s13, 4  }
 0x341   :  { %19 = sbr.rel (!%p17_p4) target bundleno = 1 (0x1), region = 96 }

</bundles_post_ra>
